<compile_context>
chip_gen: v6e
topology: v6e:2x2x1
jax: 0.10.0
libtpu: 0.0.40
codegen_flags: <defaults>
</compile_context>

<pallas_src>
import jax
import jax.numpy as jnp
import numpy as np
from jax.experimental import pallas as pl
from jax.experimental.pallas import tpu as pltpu


def _jains_spectrum_loss_kernel(spec_ref, mask_ref, cnt_ref, out_ref):
    # spec_ref: (TB, A) f32 VMEM
    # mask_ref: (P, TB, A) int8 VMEM   (0/1 peak masks, batch/angle on the minor dims)
    # cnt_ref : (TB, P) f32 VMEM       (precomputed peak sizes; 0 for absent/padded peaks)
    # out_ref : (1, 1) f32 SMEM        (per-tile partial sum of -jains)
    spec = spec_ref[...]                                   # (TB, A) f32
    cnt = cnt_ref[...]                                     # (TB, P) f32
    num_peaks = mask_ref.shape[0]
    tb = spec.shape[0]

    acc = jnp.zeros((tb, 1), jnp.float32)
    for p in range(num_peaks):                             # short static unroll (P small)
        m = mask_ref[p].astype(jnp.float32)                # (TB, A): int8 -> f32 on VPU
        mx = m * spec                                      # masked spectrum (reused below)
        sum_x = jnp.sum(mx, axis=-1, keepdims=True)        # (TB, 1)  lane reduce -> XLU
        sum_x2 = jnp.sum(mx * spec, axis=-1, keepdims=True)  # (TB, 1)  = sum(mask * x^2)
        n = cnt[:, p:p + 1]                                # (TB, 1)
        # Zero-padded rows / absent peaks give 0 / (0 + 1e-8) = 0 -> contribute nothing.
        acc = acc + (sum_x * sum_x) / (n * sum_x2 + 1e-8)
    out_ref[0, 0] = -jnp.sum(acc)                          # unnormalized tile partial


def _round_up(x: int, m: int) -> int:
    return ((x + m - 1) // m) * m


def _vmem_capacity_bytes() -> int:
    """Per-core VMEM capacity; conservative (v7x per-TC) fallback if query fails."""
    try:
        info = pltpu.get_tpu_info()
        cap = getattr(info, "vmem_capacity_bytes", None)
        if cap:
            return int(cap)
    except Exception:
        pass
    return 64 * 1024 * 1024


def _choose_batch_tile(B: int, P: int, A: int, vmem_cap: int) -> int:
    """Batch tile (multiple of 8) sized from what actually lands in VMEM."""
    # Double-buffered DMA-resident inputs per batch row:
    #   mask (P, TB, A) int8 -> P*A bytes, spectrum (TB, A) f32 -> 4*A, counts -> 4*P.
    per_row_dma = 2 * (P * A * 1 + A * 4 + P * 4)
    # In-kernel f32 live slabs per row (spec, mask cast, masked products, sums, acc), generous.
    per_row_live = 8 * A * 4
    per_row = per_row_dma + per_row_live

    budget = vmem_cap // 2                                 # leave headroom for the scheduler
    tb = budget // max(per_row, 1)
    tb = min(tb, 2048)                                     # big tiles amortize step overhead
    tb = max(8, (tb // 32) * 32)                           # int8 sublane tile = 32

    b_ceil = _round_up(B, 8)
    if b_ceil >= 16:
        # Keep >= 2 grid tiles so v7x can shard the parallel axis across its 2 TensorCores.
        half = max(8, _round_up((b_ceil + 1) // 2, 8))
        tb = min(tb, half)
    tb = min(tb, b_ceil)
    return max(tb, 8)


def unsupervised_spectrum_loss(spectrum: jax.Array, masks: jax.Array,
                               counts: jax.Array | None = None) -> jax.Array:
    """spectrum: (B, A) float32; masks: (P, B, A) 0/1 peak masks; counts: (B, P) peak sizes."""
    B, A = spectrum.shape
    P, Bm, Am = masks.shape
    assert Bm == B and Am == A

    spectrum = spectrum.astype(jnp.float32)
    masks = masks.astype(jnp.int8)                         # 0/1 mask: int8 halves HBM bytes
    if counts is None:
        counts = jnp.sum(masks.astype(jnp.float32), axis=-1).T   # (B, P)
    counts = counts.astype(jnp.float32)

    vmem_cap = _vmem_capacity_bytes()
    TB = _choose_batch_tile(B, P, A, vmem_cap)
    B_pad = _round_up(B, TB)
    if B_pad != B:                                         # zero rows contribute exactly 0
        spectrum = jnp.pad(spectrum, ((0, B_pad - B), (0, 0)))
        masks = jnp.pad(masks, ((0, 0), (0, B_pad - B), (0, 0)))
        counts = jnp.pad(counts, ((0, B_pad - B), (0, 0)))
    num_tiles = B_pad // TB

    grid_spec = pltpu.PrefetchScalarGridSpec(
        num_scalar_prefetch=0,
        grid=(num_tiles,),
        in_specs=[
            pl.BlockSpec((TB, A), lambda i: (i, 0)),
            pl.BlockSpec((P, TB, A), lambda i: (0, i, 0)),
            pl.BlockSpec((TB, P), lambda i: (i, 0)),
        ],
        out_specs=pl.BlockSpec((1, 1), lambda i: (i, 0),
                               memory_space=pltpu.MemorySpace.SMEM),
    )
    partials = pl.pallas_call(
        _jains_spectrum_loss_kernel,
        out_shape=jax.ShapeDtypeStruct((num_tiles, 1), jnp.float32),
        grid_spec=grid_spec,
        compiler_params=pltpu.CompilerParams(
            dimension_semantics=("parallel",),
            vmem_limit_bytes=int(vmem_cap * 3 // 4),       # ~48 MiB on v7x, ~96 MiB on v5e/v6e
        ),
    )(spectrum, masks, counts)

    return jnp.sum(partials) / B                           # normalize by ORIGINAL batch size


def _reference_loss(spectrum: np.ndarray, peak_index_lists) -> float:
    """Pure-numpy replica of the PyTorch forward (explicit index gather + loop)."""
    total = 0.0
    B = spectrum.shape[0]
    for b in range(B):
        spec_b = spectrum[b]
        for idx in peak_index_lists[b]:
            x = spec_b[idx]
            n = x.shape[0]
            s = float(np.sum(x))
            s2 = float(np.sum(x ** 2))
            total += -(s * s / (n * s2 + 1e-8))
    return total / B


if __name__ == "__main__":
    key = jax.random.PRNGKey(0)
    B, A, P = 2, 128, 3          # batch, num_angles, peaks per batch
    half_width = 3               # peak region half-width -> 7 indices per peak

    k_spec, k_centers = jax.random.split(key)
    # MUSIC-like spectrum: non-negative values
    spectrum = jnp.abs(jax.random.normal(k_spec, (B, A), dtype=jnp.float32)) + 0.1

    # Deterministic peak centers away from the edges so each peak has exactly 7 indices.
    centers = jax.random.randint(k_centers, (B, P), half_width, A - half_width - 1)
    centers_np = np.asarray(centers)

    # Build the PyTorch-style peak_masks (list of index arrays per batch) ...
    peak_index_lists = [
        [np.arange(c - half_width, c + half_width + 1, dtype=np.int64) for c in centers_np[b]]
        for b in range(B)
    ]
    # ... and densify to the kernel layout: (P, B, A) int8 masks + (B, P) peak counts.
    masks_np = np.zeros((P, B, A), dtype=np.int8)
    counts_np = np.zeros((B, P), dtype=np.float32)
    for b in range(B):
        for p, idx in enumerate(peak_index_lists[b]):
            masks_np[p, b, idx] = 1
            counts_np[b, p] = len(idx)
    masks = jnp.asarray(masks_np)
    counts = jnp.asarray(counts_np)

    loss = unsupervised_spectrum_loss(spectrum, masks, counts)
    loss = jax.block_until_ready(loss)

    ref = _reference_loss(np.asarray(spectrum), peak_index_lists)
    assert np.isfinite(float(loss))
    assert abs(float(loss) - ref) < 1e-4, (float(loss), ref)

    print("KERNEL_OK")
</pallas_src>

<mosaic_0001>
module attributes {stable_mosaic.version = 11 : i64} {
  func.func @_jains_spectrum_loss_kernel(%arg0: i32, %arg1: memref<8x128xf32, #tpu.memory_space<vmem>>, %arg2: memref<3x8x128xi8, #tpu.memory_space<vmem>>, %arg3: memref<8x3xf32, #tpu.memory_space<vmem>>, %arg4: memref<1x1xf32, #tpu.memory_space<smem>>) attributes {dimension_semantics = [#tpu.dimension_semantics<parallel>], iteration_bounds = array<i64: 1>, scalar_prefetch = 0 : i64, scratch_operands = 0 : i64, tpu.core_type = #tpu.core_type<tc>, window_params = [{transform_indices = @transform_0, window_bounds = array<i64: 8, 128>}, {transform_indices = @transform_1, window_bounds = array<i64: 3, 8, 128>}, {transform_indices = @transform_2, window_bounds = array<i64: 8, 3>}, {transform_indices = @transform_3, window_bounds = array<i64: 1, 1>}]} {
    %c0 = arith.constant 0 : index
    %c0_0 = arith.constant 0 : index
    %0 = vector.load %arg1[%c0, %c0_0] : memref<8x128xf32, #tpu.memory_space<vmem>>, vector<8x128xf32>
    %c0_1 = arith.constant 0 : index
    %c0_2 = arith.constant 0 : index
    %1 = vector.load %arg3[%c0_1, %c0_2] : memref<8x3xf32, #tpu.memory_space<vmem>>, vector<8x3xf32>
    %cst = arith.constant 0.000000e+00 : f32
    %2 = vector.broadcast %cst : f32 to vector<8x1xf32>
    %c0_3 = arith.constant 0 : index
    %c0_4 = arith.constant 0 : index
    %c0_5 = arith.constant 0 : index
    %3 = vector.load %arg2[%c0_3, %c0_4, %c0_5] : memref<3x8x128xi8, #tpu.memory_space<vmem>>, vector<1x8x128xi8>
    %4 = vector.shape_cast %3 : vector<1x8x128xi8> to vector<8x128xi8>
    %5 = arith.sitofp %4 : vector<8x128xi8> to vector<8x128xf32>
    %6 = arith.mulf %5, %0 : vector<8x128xf32>
    %cst_6 = arith.constant dense<0.000000e+00> : vector<8xf32>
    %7 = vector.multi_reduction <add>, %6, %cst_6 [1] : vector<8x128xf32> to vector<8xf32>
    %8 = vector.shape_cast %7 : vector<8xf32> to vector<8x1xf32>
    %9 = arith.mulf %6, %0 : vector<8x128xf32>
    %cst_7 = arith.constant dense<0.000000e+00> : vector<8xf32>
    %10 = vector.multi_reduction <add>, %9, %cst_7 [1] : vector<8x128xf32> to vector<8xf32>
    %11 = vector.shape_cast %10 : vector<8xf32> to vector<8x1xf32>
    %12 = vector.extract_strided_slice %1 {offsets = [0, 0], sizes = [8, 1], strides = [1, 1]} : vector<8x3xf32> to vector<8x1xf32>
    %13 = arith.mulf %8, %8 : vector<8x1xf32>
    %14 = arith.mulf %12, %11 : vector<8x1xf32>
    %cst_8 = arith.constant 9.99999993E-9 : f32
    %15 = vector.broadcast %cst_8 : f32 to vector<8x1xf32>
    %16 = arith.addf %14, %15 : vector<8x1xf32>
    %17 = arith.divf %13, %16 : vector<8x1xf32>
    %18 = arith.addf %2, %17 : vector<8x1xf32>
    %c1 = arith.constant 1 : index
    %c0_9 = arith.constant 0 : index
    %c0_10 = arith.constant 0 : index
    %19 = vector.load %arg2[%c1, %c0_9, %c0_10] : memref<3x8x128xi8, #tpu.memory_space<vmem>>, vector<1x8x128xi8>
    %20 = vector.shape_cast %19 : vector<1x8x128xi8> to vector<8x128xi8>
    %21 = arith.sitofp %20 : vector<8x128xi8> to vector<8x128xf32>
    %22 = arith.mulf %21, %0 : vector<8x128xf32>
    %cst_11 = arith.constant dense<0.000000e+00> : vector<8xf32>
    %23 = vector.multi_reduction <add>, %22, %cst_11 [1] : vector<8x128xf32> to vector<8xf32>
    %24 = vector.shape_cast %23 : vector<8xf32> to vector<8x1xf32>
    %25 = arith.mulf %22, %0 : vector<8x128xf32>
    %cst_12 = arith.constant dense<0.000000e+00> : vector<8xf32>
    %26 = vector.multi_reduction <add>, %25, %cst_12 [1] : vector<8x128xf32> to vector<8xf32>
    %27 = vector.shape_cast %26 : vector<8xf32> to vector<8x1xf32>
    %28 = vector.extract_strided_slice %1 {offsets = [0, 1], sizes = [8, 1], strides = [1, 1]} : vector<8x3xf32> to vector<8x1xf32>
    %29 = arith.mulf %24, %24 : vector<8x1xf32>
    %30 = arith.mulf %28, %27 : vector<8x1xf32>
    %cst_13 = arith.constant 9.99999993E-9 : f32
    %31 = vector.broadcast %cst_13 : f32 to vector<8x1xf32>
    %32 = arith.addf %30, %31 : vector<8x1xf32>
    %33 = arith.divf %29, %32 : vector<8x1xf32>
    %34 = arith.addf %18, %33 : vector<8x1xf32>
    %c2 = arith.constant 2 : index
    %c0_14 = arith.constant 0 : index
    %c0_15 = arith.constant 0 : index
    %35 = vector.load %arg2[%c2, %c0_14, %c0_15] : memref<3x8x128xi8, #tpu.memory_space<vmem>>, vector<1x8x128xi8>
    %36 = vector.shape_cast %35 : vector<1x8x128xi8> to vector<8x128xi8>
    %37 = arith.sitofp %36 : vector<8x128xi8> to vector<8x128xf32>
    %38 = arith.mulf %37, %0 : vector<8x128xf32>
    %cst_16 = arith.constant dense<0.000000e+00> : vector<8xf32>
    %39 = vector.multi_reduction <add>, %38, %cst_16 [1] : vector<8x128xf32> to vector<8xf32>
    %40 = vector.shape_cast %39 : vector<8xf32> to vector<8x1xf32>
    %41 = arith.mulf %38, %0 : vector<8x128xf32>
    %cst_17 = arith.constant dense<0.000000e+00> : vector<8xf32>
    %42 = vector.multi_reduction <add>, %41, %cst_17 [1] : vector<8x128xf32> to vector<8xf32>
    %43 = vector.shape_cast %42 : vector<8xf32> to vector<8x1xf32>
    %44 = vector.extract_strided_slice %1 {offsets = [0, 2], sizes = [8, 1], strides = [1, 1]} : vector<8x3xf32> to vector<8x1xf32>
    %45 = arith.mulf %40, %40 : vector<8x1xf32>
    %46 = arith.mulf %44, %43 : vector<8x1xf32>
    %cst_18 = arith.constant 9.99999993E-9 : f32
    %47 = vector.broadcast %cst_18 : f32 to vector<8x1xf32>
    %48 = arith.addf %46, %47 : vector<8x1xf32>
    %49 = arith.divf %45, %48 : vector<8x1xf32>
    %50 = arith.addf %34, %49 : vector<8x1xf32>
    %51 = vector.shape_cast %50 : vector<8x1xf32> to vector<1x8x1xf32>
    %cst_19 = arith.constant dense<0.000000e+00> : vector<1xf32>
    %52 = vector.multi_reduction <add>, %51, %cst_19 [1, 2] : vector<1x8x1xf32> to vector<1xf32>
    %53 = vector.shape_cast %52 : vector<1xf32> to vector<1x1x1xf32>
    %54 = vector.extract %53[0, 0, 0] : f32 from vector<1x1x1xf32>
    %cst_20 = arith.constant 0.000000e+00 : f32
    %55 = arith.subf %cst_20, %54 : f32
    %c0_21 = arith.constant 0 : index
    %c0_22 = arith.constant 0 : index
    %56 = memref.load %arg4[%c0_21, %c0_22] : memref<1x1xf32, #tpu.memory_space<smem>>
    memref.store %55, %arg4[%c0_21, %c0_22] : memref<1x1xf32, #tpu.memory_space<smem>>
    return
  }
  func.func @transform_0(%arg0: i32) -> (i32, i32) {
    %c0_i32 = arith.constant 0 : i32
    %c0_i32_0 = arith.constant 0 : i32
    return %arg0, %c0_i32 : i32, i32
  }
  func.func @transform_1(%arg0: i32) -> (i32, i32, i32) {
    %c0_i32 = arith.constant 0 : i32
    %c0_i32_0 = arith.constant 0 : i32
    %c0_i32_1 = arith.constant 0 : i32
    return %c0_i32, %arg0, %c0_i32_0 : i32, i32, i32
  }
  func.func @transform_2(%arg0: i32) -> (i32, i32) {
    %c0_i32 = arith.constant 0 : i32
    %c0_i32_0 = arith.constant 0 : i32
    return %arg0, %c0_i32 : i32, i32
  }
  func.func @transform_3(%arg0: i32) -> (i32, i32) {
    %c0_i32 = arith.constant 0 : i32
    %c0_i32_0 = arith.constant 0 : i32
    return %arg0, %c0_i32 : i32, i32
  }
}

</mosaic_0001>

<bundles_post_ra>
// kernel: tpu_custom_call.1
= control target key start
LH: loop header
LB: loop body
LE: loop exit
PB: predicated region body
PF: predicated region fallthrough
CT: control target
= control target key end

     0   :  { %8 = vsyncpa [#allocation3], 0  ;;  %s202_s0 = inlined_call_operand.vmem [shape: f32[8,128], index: 0, kind: input, shape index: {}]   ;;  %s203_s1 = inlined_call_operand.hbm [shape: s8[3,8,128], index: 1, kind: input, shape index: {}]   ;;  %s204_s2 = inlined_call_operand.vmem [shape: f32[8,3], index: 2, kind: input, shape index: {}]   ;;  %s205_s3 = inlined_call_operand.hbm [shape: f32[1,1], index: 3, kind: output, shape index: {}]  }
   0x1   :  { %9 = vsyncpa [#allocation4], 0  ;;  %s164_s12 = smov [#allocation2]  }
   0x2   :  { %s17_s13 = sshll.u32 %s164_s12, 4  ;;  %s18_s13 = int_to_ptr.vmem [resolvable:$true] %s17_s13 }
   0x3   :  { %s140_s14 = scalar_lea.vmem %s18_s13, 96  ;;  %p145_p1 = scmp.lt.s32.totalorder %s18_s13, %s18_s13 }
   0x4   :  { %p141_p0 = scmp.ne.s32.totalorder %s18_s13, %s140_s14  ;;  %p146_p2 = scmp.lt.s32.totalorder %s140_s14, %s140_s14 }
   0x6   :  { %p147_p3 = por %p146_p2, %p145_p1 }
   0x8   :  { %p148_p4 = pnand %p147_p3, %p141_p0 }
   0xa   :  { %151 = shalt.err (!%p148_p4)
}
   0xb   :  { %s165_s15 = smov 32   ;;  %s166_s16 = smov 2  }
   0xc   :  { %23 = dma.hbm_to_vmem [thread:$0]  %s203_s1, 96, %s18_s13, [#allocation3], %s165_s15, %s165_s15, %s166_s16  }
   0xd   :  { %160 = dma.done.wait [#allocation3], 96  }
   0xe   :  { %161 = vsyncadd [#allocation3], 4294967200  ;;  %v115_v0 = vld [vmem:[#allocation2] sm:$0xf]   ;;  %v67_v1 = vld [vmem:[#allocation2 + $0x4] sm:$0x3] }
   0xf   :  { %v117_v2 = vunpack.c.1.s8 %v115_v0  ;;  %v68_v3 = vunpack.c.0.s8 %v67_v1  ;;  %v116_v4 = vunpack.c.0.s8 %v115_v0  ;;  %v29_v5 = vld [vmem:[%s202_s0] sm:$0xff]  ;;  %s167_s0 = smov 127   ;;  %s168_s22 = smov 126   ;;  %vm86_vm0 = vcmask 7168  }
  0x10   :  { %v30_v15 = vld [vmem:[%s204_s2] sm:$0xff]  ;;  %s169_s24 = smov [#allocation5]  }
  0x11   :  { %v49_v6 = vcvt.s32.f32 %v117_v2  ;;  %v69_v7 = vcvt.s32.f32 %v68_v3  ;;  %v33_v10 = vcvt.s32.f32 %v116_v4 }
  0x13   :  { %v50_v8 = vmul.f32 %v49_v6, %v29_v5  ;;  %v70_v9 = vmul.f32 %v69_v7, %v29_v5  ;;  %v34_v13 = vmul.f32 %v33_v10, %v29_v5 }
  0x15   :  { %v53_v11 = vmul.f32 %v50_v8, %v29_v5  ;;  %51 = vadd.xlane.f32.xlu1 %v50_v8  ;;  %v73_v12 = vmul.f32 %v70_v9, %v29_v5  ;;  %v37_v14 = vmul.f32 %v34_v13, %v29_v5 }
  0x17   :  { %54 = vadd.xlane.f32.xlu0 %v53_v11 }
  0x19   :  { %71 = vadd.xlane.f32.xlu1 %v70_v9 }
  0x1b   :  { %74 = vadd.xlane.f32.xlu0 %v73_v12 }
  0x1d   :  { %35 = vadd.xlane.f32.xlu1 %v34_v13 }
  0x1f   :  { %38 = vadd.xlane.f32.xlu0 %v37_v14 }
  0x9e   :  { %v52_v22 = vpop.xlane.xlu1 %51 }
  0x9f   :  { %v56_v23 = vmul.f32 %v52_v22, %v52_v22 }
  0xa0   :  { %v55_v16 = vpop.xlane.xlu0 %54 }
  0xa1   :  { %v57_v17 = vmul.f32 %v55_v16, %v30_v15 }
  0xa2   :  { %v72_v24 = vpop.xlane.xlu1 %71 }
  0xa3   :  { %v58_v18 = vadd.f32 1e-08, %v57_v17  ;;  %v76_v27 = vmul.f32 %v72_v24, %v72_v24 }
  0xa4   :  { %v75_v19 = vpop.xlane.xlu0 %74 }
  0xa5   :  { %126 = vrcp.f32 %v58_v18  ;;  %v77_v20 = vmul.f32 %v75_v19, %v30_v15 }
  0xa6   :  { %v36_v33 = vpop.xlane.xlu1 %35 }
  0xa7   :  { %v78_v21 = vadd.f32 1e-08, %v77_v20  ;;  %v40_v34 = vmul.f32 %v36_v33, %v36_v33 }
  0xa8   :  { %v39_v30 = vpop.xlane.xlu0 %38 }
  0xa9   :  { %128 = vrcp.f32 %v78_v21  ;;  %v41_v31 = vmul.f32 %v39_v30, %v30_v15 }
  0xab   :  { %v42_v32 = vadd.f32 1e-08, %v41_v31 }
  0xad   :  { %130 = vrcp.f32 %v42_v32 }
  0xb2   :  { %v127_v25 = vpop.eup %126 }
  0xb3   :  { %v60_v26 = vmul.f32 %v127_v25, %v56_v23 }
  0xb5   :  { %62 = vrot.lane.b32.xlu0 %v60_v26, %s167_s0 }
  0xb6   :  { %v129_v28 = vpop.eup %128 }
  0xb7   :  { %v80_v29 = vmul.f32 %v129_v28, %v76_v27 }
  0xb9   :  { %82 = vrot.lane.b32.xlu1 %v80_v29, %s168_s22 }
  0xba   :  { %v131_v35 = vpop.eup %130 }
  0xbb   :  { %v44_v36 = vmul.f32 %v131_v35, %v40_v34 }
 0x127   :  { %v63_v37 = vpop.permute.xlu0 %62 }
 0x128   :  { %v65_v38 = vadd.f32 %v63_v37, %v44_v36 }
 0x12b   :  { %v83_v39 = vpop.permute.xlu1 %82 }
 0x12c   :  { %v85_v40 = vadd.f32 %v83_v39, %v65_v38 }
 0x12e   :  { %v87_v41 = vsel %vm86_vm0, %v85_v40, 0.0 }
 0x12f   :  { %88 = vadd.xlane.f32.xlu1 %v87_v41 }
 0x1b8   :  { %v89_v42 = vpop.xlane.xlu1 %88 }
 0x1b9   :  { %v90_v43 = vrot.slane %v89_v42, 4 }
 0x1bb   :  { %v91_v44 = vadd.f32 %v90_v43, %v89_v42 }
 0x1bd   :  { %v92_v45 = vrot.slane %v91_v44, 2 }
 0x1bf   :  { %v93_v46 = vadd.f32 %v92_v45, %v91_v44 }
 0x1c1   :  { %v94_v47 = vrot.slane %v93_v46, 1 }
 0x1c3   :  { %v95_v48 = vadd.f32 %v94_v47, %v93_v46 }
 0x1c5   :  { %118 = vpush %v95_v48 }
 0x1f6   :  { %s119_s2 = spop %118 }
 0x1f7   :  { %s97_s23 = ssub.f32 0.0, %s119_s2 }
 0x1f9   :  { %99 = sst [smem:[#allocation5]] %s97_s23 }
 0x1fa   :  { %107 = dma.smem_to_hbm %s169_s24, 16, %s205_s3, [#allocation4]  }
 0x1fb   :  { %162 = dma.done.wait [#allocation4], 16  }
 0x1fc   :  { %163 = vsyncadd [#allocation4], 4294967280 }
 0x1fd   :  { %111 = sfence }
 0x1fe   :  { %112 = vsyncpa [#allocation3], 1 }
 0x1ff   :  { %113 = vsyncpa [#allocation4], 1 }

</bundles_post_ra>
